<compile_context>
chip_gen: v7x
topology: tpu7x:2x2x1
jax: 0.10.0
libtpu: 0.0.40
codegen_flags: <defaults>
</compile_context>

<pallas_src>
import math

import jax
import jax.numpy as jnp
from jax.experimental import pallas as pl
from jax.experimental.pallas import tpu as pltpu


_NEG_LARGE = -1e30  # padding value for the vocab dim of the bias


def _round_up(x, m):
    return (x + m - 1) // m * m


def _vmem_bytes(tm, d, width):
    """Estimated resident VMEM for a row tile of `tm` against vocab width `width`."""
    return (2 * tm * d * 2            # x tiles (double buffered, bf16)
            + 2 * d * width * 2       # weight tiles (bf16)
            + 2 * 8 * width * 4       # bias tiles (sublane padded, f32)
            + 2 * tm * width * 4      # output tiles (f32)
            + tm * width * 4          # f32 logits temporary
            + 2 * tm * 128 * 4)       # scratch (lane padded)


# ---------------------------------------------------------------------------
# Single-pass kernel: full (padded) vocab resident per row tile (small V).
# ---------------------------------------------------------------------------
def _proj_logsoftmax_kernel(x_ref, w_ref, b_ref, o_ref):
    # x_ref: (TM, D) bf16, w_ref: (D, V) bf16, b_ref: (1, V) f32, o_ref: (TM, V) f32
    logits = jnp.dot(x_ref[...], w_ref[...], preferred_element_type=jnp.float32)
    logits = logits + b_ref[...]
    m = jnp.max(logits, axis=-1, keepdims=True)
    shifted = logits - m
    lse = jnp.log(jnp.sum(jnp.exp(shifted), axis=-1, keepdims=True))
    o_ref[...] = (shifted - lse).astype(o_ref.dtype)


# ---------------------------------------------------------------------------
# Two-pass kernel for vocab tiling (large V).
#   grid = (num_m, 2, num_v); pass p=0 accumulates an online max / rescaled
#   sum over vocab tiles, pass p=1 recomputes each logits tile and writes
#   logits - logsumexp.  Output block index is (i, j*p): during pass 0 the
#   output block stays parked on (i, 0) and is only written (and written back)
#   during pass 1, so every output HBM tile is written exactly once.
# ---------------------------------------------------------------------------
def _proj_logsoftmax_vtiled_kernel(x_ref, w_ref, b_ref, o_ref, m_sc, l_sc):
    p = pl.program_id(1)
    j = pl.program_id(2)

    logits = jnp.dot(x_ref[...], w_ref[...], preferred_element_type=jnp.float32)
    logits = logits + b_ref[...]  # (TM, TV) f32

    @pl.when((p == 0) & (j == 0))
    def _():
        m_sc[...] = jnp.full_like(m_sc, -jnp.inf)
        l_sc[...] = jnp.zeros_like(l_sc)

    @pl.when(p == 0)
    def _():
        m_prev = m_sc[...]
        m_new = jnp.maximum(m_prev, jnp.max(logits, axis=-1, keepdims=True))
        alpha = jnp.exp(m_prev - m_new)
        l_sc[...] = alpha * l_sc[...] + jnp.sum(
            jnp.exp(logits - m_new), axis=-1, keepdims=True)
        m_sc[...] = m_new

    @pl.when((p == 1) & (j == 0))
    def _():
        # Fold the running sum into the running max -> m_sc now holds logsumexp.
        m_sc[...] = m_sc[...] + jnp.log(l_sc[...])

    @pl.when(p == 1)
    def _():
        o_ref[...] = (logits - m_sc[...]).astype(o_ref.dtype)


def projection_layer(x, weight, bias, *, tm=256, tv=None, max_vmem_bytes=32 << 20):
    """Fused Linear(d_model -> vocab_size) + log_softmax(dim=-1).

    x: (B, S, D) float; weight: (V, D) torch layout; bias: (V,).
    Returns (B, S, V) float32 log-probabilities.
    """
    B, S, D = x.shape
    V = weight.shape[0]
    M = B * S

    # ---- tile sizes (16-aligned rows for bf16 packing, 128-aligned vocab) ----
    tm = max(16, min(tm, _round_up(M, 16)))
    tm = _round_up(tm, 16)
    Mp = _round_up(M, tm)
    num_m = Mp // tm

    Vp_full = _round_up(V, 128)
    if tv is None:
        # Prefer the single-pass (no recompute) path whenever the full vocab
        # working set fits the VMEM budget; otherwise pick the largest vocab
        # tile that fits.
        if _vmem_bytes(tm, D, Vp_full) <= max_vmem_bytes:
            tv = Vp_full
        else:
            tv = 128
            for cand in (4096, 2048, 1024, 512, 256, 128):
                if cand <= Vp_full and _vmem_bytes(tm, D, cand) <= max_vmem_bytes:
                    tv = cand
                    break
    tv = max(128, min(tv, Vp_full))
    tv = _round_up(tv, 128)
    Vp = _round_up(V, tv)
    num_v = Vp // tv

    # ---- host-side layout: pad, transpose weight, bf16 MXU operands ----------
    x2 = x.reshape(M, D)
    if Mp != M:
        x2 = jnp.pad(x2, ((0, Mp - M), (0, 0)))
    x2 = x2.astype(jnp.bfloat16)

    w_t = jnp.transpose(weight)                    # (D, V)
    b2 = bias.reshape(1, V).astype(jnp.float32)
    if Vp != V:
        w_t = jnp.pad(w_t, ((0, 0), (0, Vp - V)))
        b2 = jnp.pad(b2, ((0, 0), (0, Vp - V)), constant_values=_NEG_LARGE)
    w_t = w_t.astype(jnp.bfloat16)

    # ---- VMEM budget + scheduler hint ----------------------------------------
    vmem_est = _vmem_bytes(tm, D, tv)
    vmem_limit = int(min(max(int(1.5 * vmem_est), 16 << 20), 64 << 20))

    n_passes = 2 if num_v > 1 else 1
    cost = pl.CostEstimate(
        flops=int(2.0 * Mp * D * Vp * n_passes),
        transcendentals=int(Mp * Vp),
        bytes_accessed=int(x2.size * 2
                           + n_passes * num_m * (w_t.size * 2 + b2.size * 4)
                           + Mp * Vp * 4),
    )

    if num_v == 1:
        out2 = pl.pallas_call(
            _proj_logsoftmax_kernel,
            out_shape=jax.ShapeDtypeStruct((Mp, Vp), jnp.float32),
            grid=(num_m,),
            in_specs=[
                pl.BlockSpec((tm, D), lambda i: (i, 0)),   # row tile of x
                pl.BlockSpec((D, Vp), lambda i: (0, 0)),   # full weight
                pl.BlockSpec((1, Vp), lambda i: (0, 0)),   # bias row
            ],
            out_specs=pl.BlockSpec((tm, Vp), lambda i: (i, 0)),
            compiler_params=pltpu.CompilerParams(
                dimension_semantics=("parallel",),
                vmem_limit_bytes=vmem_limit,
            ),
            cost_estimate=cost,
        )(x2, w_t, b2)
    else:
        out2 = pl.pallas_call(
            _proj_logsoftmax_vtiled_kernel,
            out_shape=jax.ShapeDtypeStruct((Mp, Vp), jnp.float32),
            grid=(num_m, 2, num_v),
            in_specs=[
                pl.BlockSpec((tm, D), lambda i, p, j: (i, 0)),
                pl.BlockSpec((D, tv), lambda i, p, j: (0, j)),
                pl.BlockSpec((1, tv), lambda i, p, j: (0, j)),
            ],
            out_specs=pl.BlockSpec((tm, tv), lambda i, p, j: (i, j * p)),
            scratch_shapes=[
                pltpu.VMEM((tm, 1), jnp.float32),   # running max / logsumexp
                pltpu.VMEM((tm, 1), jnp.float32),   # running rescaled sum
            ],
            compiler_params=pltpu.CompilerParams(
                dimension_semantics=("parallel", "arbitrary", "arbitrary"),
                vmem_limit_bytes=vmem_limit,
            ),
            cost_estimate=cost,
        )(x2, w_t, b2)

    return out2[:M, :V].reshape(B, S, V)


def _reference(x, weight, bias):
    logits = jnp.einsum("bsd,vd->bsv", x, weight) + bias
    return jax.nn.log_softmax(logits, axis=-1)


if __name__ == "__main__":
    key = jax.random.PRNGKey(0)
    keys = jax.random.split(key, 9)

    def make_params(kw, kb, d_model, vocab):
        bound = 1.0 / math.sqrt(d_model)
        w = jax.random.uniform(kw, (vocab, d_model), minval=-bound,
                               maxval=bound, dtype=jnp.float32)
        b = jax.random.uniform(kb, (vocab,), minval=-bound, maxval=bound,
                               dtype=jnp.float32)
        return w, b

    def check(out, x, w, b, atol_bf16):
        ref_bf16 = _reference(x.astype(jnp.bfloat16).astype(jnp.float32),
                              w.astype(jnp.bfloat16).astype(jnp.float32), b)
        ref_f32 = _reference(x, w, b)
        assert jnp.allclose(out, ref_bf16, atol=atol_bf16, rtol=atol_bf16), \
            "mismatch (bf16 ref)"
        assert jnp.allclose(out, ref_f32, atol=5e-2, rtol=5e-2), \
            "mismatch (f32 ref)"

    # Case 1: d_model=32, vocab=128 — full vocab fits, single-pass fused path.
    B, S, D, V = 2, 8, 32, 128
    x = jax.random.normal(keys[0], (B, S, D), dtype=jnp.float32)
    weight, bias = make_params(keys[1], keys[2], D, V)
    out = jax.block_until_ready(projection_layer(x, weight, bias))
    assert out.shape == (B, S, V)
    check(out, x, weight, bias, 2e-4)

    # Case 2: ragged rows (B*S=14 -> padded) and forced vocab tiling (V=320,
    # tv=128 -> 3 vocab tiles), exercising the two-pass online-logsumexp path.
    B2, S2, D2, V2 = 2, 7, 32, 320
    x_b = jax.random.normal(keys[3], (B2, S2, D2), dtype=jnp.float32)
    weight2, bias2 = make_params(keys[4], keys[5], D2, V2)
    out2 = jax.block_until_ready(projection_layer(x_b, weight2, bias2, tv=128))
    assert out2.shape == (B2, S2, V2)
    check(out2, x_b, weight2, bias2, 2e-4)

    # Case 3: multiple row tiles (M=320 -> 3 tiles of 128 after padding) with
    # auto tile selection (vocab fits -> single-pass path, no recompute).
    B3, S3, D3, V3 = 2, 160, 64, 256
    x_c = jax.random.normal(keys[6], (B3, S3, D3), dtype=jnp.float32)
    weight3, bias3 = make_params(keys[7], keys[8], D3, V3)
    out3 = jax.block_until_ready(projection_layer(x_c, weight3, bias3, tm=128))
    assert out3.shape == (B3, S3, V3)
    check(out3, x_c, weight3, bias3, 5e-4)

    print("KERNEL_OK")
</pallas_src>

<mosaic_0001>
module attributes {stable_mosaic.version = 11 : i64} {
  func.func @_proj_logsoftmax_kernel(%arg0: i32, %arg1: memref<16x32xbf16, #tpu.memory_space<vmem>>, %arg2: memref<32x128xbf16, #tpu.memory_space<vmem>>, %arg3: memref<1x128xf32, #tpu.memory_space<vmem>>, %arg4: memref<16x128xf32, #tpu.memory_space<vmem>>) attributes {dimension_semantics = [#tpu.dimension_semantics<parallel>], iteration_bounds = array<i64: 1>, scalar_prefetch = 0 : i64, scratch_operands = 0 : i64, tpu.core_type = #tpu.core_type<tc>, window_params = [{transform_indices = @transform_0, window_bounds = array<i64: 16, 32>}, {pipeline_mode = #tpu.pipeline_mode<synchronous>, transform_indices = @transform_1, window_bounds = array<i64: 32, 128>}, {pipeline_mode = #tpu.pipeline_mode<synchronous>, transform_indices = @transform_2, window_bounds = array<i64: 1, 128>}, {transform_indices = @transform_3, window_bounds = array<i64: 16, 128>}]} {
    %c0 = arith.constant 0 : index
    %c0_0 = arith.constant 0 : index
    %0 = vector.load %arg1[%c0, %c0_0] : memref<16x32xbf16, #tpu.memory_space<vmem>>, vector<16x32xbf16>
    %c0_1 = arith.constant 0 : index
    %c0_2 = arith.constant 0 : index
    %1 = vector.load %arg2[%c0_1, %c0_2] : memref<32x128xbf16, #tpu.memory_space<vmem>>, vector<32x128xbf16>
    %cst = arith.constant dense<0.000000e+00> : vector<16x128xf32>
    %2 = tpu.matmul %0, %1, %cst {dimension_numbers = #tpu.dot_dimension_numbers<[1], [0], [0], [1], [0, 0, 1, 1], [], []>} : vector<16x32xbf16>, vector<32x128xbf16>, vector<16x128xf32> -> vector<16x128xf32>
    %c0_3 = arith.constant 0 : index
    %c0_4 = arith.constant 0 : index
    %3 = vector.load %arg3[%c0_3, %c0_4] : memref<1x128xf32, #tpu.memory_space<vmem>>, vector<1x128xf32>
    %4 = vector.broadcast %3 : vector<1x128xf32> to vector<16x128xf32>
    %5 = arith.addf %2, %4 : vector<16x128xf32>
    %cst_5 = arith.constant dense<0xFF800000> : vector<16xf32>
    %6 = vector.multi_reduction <maximumf>, %5, %cst_5 [1] : vector<16x128xf32> to vector<16xf32>
    %7 = vector.shape_cast %6 : vector<16xf32> to vector<16x1xf32>
    %8 = vector.broadcast %7 : vector<16x1xf32> to vector<16x128xf32>
    %9 = arith.subf %5, %8 : vector<16x128xf32>
    %10 = math.exp %9 : vector<16x128xf32>
    %cst_6 = arith.constant dense<0.000000e+00> : vector<16xf32>
    %11 = vector.multi_reduction <add>, %10, %cst_6 [1] : vector<16x128xf32> to vector<16xf32>
    %12 = vector.shape_cast %11 : vector<16xf32> to vector<16x1xf32>
    %13 = math.log %12 : vector<16x1xf32>
    %14 = vector.broadcast %13 : vector<16x1xf32> to vector<16x128xf32>
    %15 = arith.subf %9, %14 : vector<16x128xf32>
    %c0_7 = arith.constant 0 : index
    %c0_8 = arith.constant 0 : index
    %16 = vector.load %arg4[%c0_7, %c0_8] : memref<16x128xf32, #tpu.memory_space<vmem>>, vector<16x128xf32>
    tpu.vector_store %arg4[%c0_7, %c0_8], %15 {strides = array<i32>} : memref<16x128xf32, #tpu.memory_space<vmem>>, vector<16x128xf32>,
    return
  }
  func.func @transform_0(%arg0: i32) -> (i32, i32) {
    %c0_i32 = arith.constant 0 : i32
    %c0_i32_0 = arith.constant 0 : i32
    return %arg0, %c0_i32 : i32, i32
  }
  func.func @transform_1(%arg0: i32) -> (i32, i32) {
    %c0_i32 = arith.constant 0 : i32
    %c0_i32_0 = arith.constant 0 : i32
    %c0_i32_1 = arith.constant 0 : i32
    return %c0_i32, %c0_i32_0 : i32, i32
  }
  func.func @transform_2(%arg0: i32) -> (i32, i32) {
    %c0_i32 = arith.constant 0 : i32
    %c0_i32_0 = arith.constant 0 : i32
    %c0_i32_1 = arith.constant 0 : i32
    return %c0_i32, %c0_i32_0 : i32, i32
  }
  func.func @transform_3(%arg0: i32) -> (i32, i32) {
    %c0_i32 = arith.constant 0 : i32
    %c0_i32_0 = arith.constant 0 : i32
    return %arg0, %c0_i32 : i32, i32
  }
}

</mosaic_0001>

<bundles_post_ra>
// kernel: tpu_custom_call.1
= control target key start
LH: loop header
LB: loop body
LE: loop exit
PB: predicated region body
PF: predicated region fallthrough
CT: control target
= control target key end

     0   :  { %8 = vsyncpa [#allocation3], 0  ;;  %s335_s0 = inlined_call_operand.hbm [shape: bf16[16,32], index: 0, kind: input, shape index: {}]   ;;  %s336_s1 = inlined_call_operand.hbm [shape: bf16[32,128], index: 1, kind: input, shape index: {}]   ;;  %s337_s2 = inlined_call_operand.vmem [shape: f32[1,128], index: 2, kind: input, shape index: {}]   ;;  %s338_s3 = inlined_call_operand.hbm [shape: f32[16,128], index: 3, kind: output, shape index: {}]  }
   0x1   :  { %9 = vsyncpa [#allocation6], 0 }
   0x2   :  { %10 = vsyncpa [#allocation4], 0  ;;  %s267_s12 = smov [#allocation2]   ;;  %s195_s16 = scalar_lea.hbm %s335_s0, 128 }
   0x3   :  { %s16_s13 = sshll.u32 %s267_s12, 4  ;;  %p196_p0 = scmp.ne.s32.totalorder %s335_s0, %s195_s16  ;;  %s17_s13 = int_to_ptr.vmem [resolvable:$true] %s16_s13 }
   0x4   :  { %p199_p1 = scmp.lt.u32.totalorder %s195_s16, %s335_s0 }
   0x6   :  { %p201_p2 = pnand %p199_p1, %p196_p0 }
   0x8   :  { %204 = shalt.err (!%p201_p2)
}
   0x9   :  { %s205_s21 = scalar_lea.vmem %s17_s13, 128  ;;  %p210_p4 = scmp.lt.s32.totalorder %s17_s13, %s17_s13 }
   0xa   :  { %p206_p3 = scmp.ne.s32.totalorder %s17_s13, %s205_s21  ;;  %p211_p5 = scmp.lt.s32.totalorder %s205_s21, %s205_s21 }
   0xc   :  { %p212_p6 = por %p211_p5, %p210_p4 }
   0xe   :  { %p213_p7 = pnand %p212_p6, %p206_p3 }
  0x10   :  { %216 = shalt.err (!%p213_p7)
}
  0x11   :  { %s268_s22 = smov 64   ;;  %s269_s23 = smov 4  }
  0x12   :  { %22 = dma.hbm_to_vmem [thread:$0]  %s335_s0, 128, %s17_s13, [#allocation3], %s268_s22, %s268_s22, %s269_s23  }
  0x13   :  { %s270_s26 = smov [#allocation5]   ;;  %s217_s30 = scalar_lea.hbm %s336_s1, 256 }
  0x14   :  { %s28_s27 = sshll.u32 %s270_s26, 4  ;;  %p218_p8 = scmp.ne.s32.totalorder %s336_s1, %s217_s30  ;;  %s29_s27 = int_to_ptr.vmem [resolvable:$true] %s28_s27 }
  0x15   :  { %p221_p9 = scmp.lt.u32.totalorder %s217_s30, %s336_s1 }
  0x17   :  { %p223_p10 = pnand %p221_p9, %p218_p8 }
  0x19   :  { %226 = shalt.err (!%p223_p10)
}
  0x1a   :  { %s227_s8 = scalar_lea.vmem %s29_s27, 256  ;;  %p232_p12 = scmp.lt.s32.totalorder %s29_s27, %s29_s27 }
  0x1b   :  { %p228_p11 = scmp.ne.s32.totalorder %s29_s27, %s227_s8  ;;  %p233_p13 = scmp.lt.s32.totalorder %s227_s8, %s227_s8 }
  0x1d   :  { %p234_p0 = por %p233_p13, %p232_p12 }
  0x1f   :  { %p235_p1 = pnand %p234_p0, %p228_p11 }
  0x21   :  { %238 = shalt.err (!%p235_p1)
}
  0x22   :  { %34 = dma.hbm_to_vmem [thread:$0]  %s336_s1, 256, %s29_s27, [#allocation6], %s268_s22, %s268_s22, %s269_s23  }
  0x23   :  { %261 = dma.done.wait [#allocation3], 128  }
  0x24   :  { %262 = vsyncadd [#allocation3], 4294967168 }
  0x25   :  { %263 = dma.done.wait [#allocation6], 256  }
  0x26   :  { %264 = vsyncadd [#allocation6], 4294967040  ;;  %v271_v0 = vmov 0.0   ;;  %vm272_vm0 = vmmov 0   ;;  %v184_v1 = vld [vmem:[#allocation5] sm:$0xff]   ;;  %v185_v2 = vld [vmem:[#allocation5 + $0x8] sm:$0xff]  }
  0x27   :  { %167 = vmatprep.subr.bf16.mxu0 %v271_v0  ;;  %171 = vmatprep.mubr.msk.bf16.mxu0 %vm272_vm0, %v271_v0  ;;  %v186_v3 = vld [vmem:[#allocation2] sm:$0xff]   ;;  %vm74_vm1 = vcmask 261120   ;;  %s273_s1 = smov [#allocation7]  }
  0x28   :  { %168 = vmatpush3.bf16.msra.mxu0 %v184_v1  ;;  %v159_v4 = vld [vmem:[%s337_s2] ss:$0 sm:$0xff]  ;;  %s146_s2 = sshll.u32 %s273_s1, 4  ;;  %s147_s2 = int_to_ptr.vmem [resolvable:$true] %s146_s2 }
  0x29   :  { %169 = vmatprep.subr.bf16.mxu0 %v271_v0  ;;  %s239_s12 = scalar_lea.vmem %s147_s2, 256  ;;  %p244_p3 = scmp.lt.s32.totalorder %s147_s2, %s147_s2 }
  0x2a   :  { %p240_p2 = scmp.ne.s32.totalorder %s147_s2, %s239_s12  ;;  %p245_p4 = scmp.lt.s32.totalorder %s239_s12, %s239_s12 }
  0x2c   :  { %170 = vmatpush3.bf16.msra.mxu0 %v185_v2  ;;  %p246_p5 = por %p245_p4, %p244_p3 }
  0x2e   :  { %p247_p6 = pnand %p246_p5, %p240_p2 }
  0x2f   :  { %172 = vmatmul.mubr.msk.bf16.vlgmr.msra.gmra.mrb[0].mxu0 %vm74_vm1, %v186_v3 }
 0x102   :  { %v112_v5 = vpop.f32.mrb[0].mxu0 }
 0x103   :  { %v113_v6 = vadd.f32 %v159_v4, %v112_v5  ;;  %v173_v7 = vpop.f32.mrb[1].mxu0 }
 0x104   :  { %v115_v8 = vpop.f32.mrb[2].mxu0 }
 0x105   :  { %119 = vmax.xlane.f32.xlu0 %v113_v6  ;;  %v174_v9 = vpop.f32.mrb[3].mxu0  ;;  %v116_v10 = vadd.f32 %v159_v4, %v115_v8 }
 0x109   :  { %121 = vmax.xlane.f32.xlu0 %v116_v10 }
 0x192   :  { %v120_v11 = vpop.xlane.xlu0 %119 }
 0x193   :  { %v123_v12 = vsub.f32 %v113_v6, %v120_v11 }
 0x195   :  { %v125_v13 = vmul.f32 1.442695, %v123_v12 }
 0x196   :  { %v122_v14 = vpop.xlane.xlu0 %121 }
 0x197   :  { %v124_v15 = vsub.f32 %v116_v10, %v122_v14  ;;  %187 = vpow2.f32 %v125_v13 }
 0x199   :  { %v127_v16 = vmul.f32 1.442695, %v124_v15 }
 0x19b   :  { %189 = vpow2.f32 %v127_v16 }
 0x1a1   :  { %v188_v17 = vpop.eup %187 }
 0x1a2   :  { %129 = vadd.xlane.f32.xlu1 %v188_v17 }
 0x1a5   :  { %v190_v18 = vpop.eup %189 }
 0x1a6   :  { %131 = vadd.xlane.f32.xlu1 %v190_v18 }
 0x22f   :  { %v130_v19 = vpop.xlane.xlu1 %129 }
 0x230   :  { %191 = vlog2.f32 %v130_v19 }
 0x233   :  { %v132_v20 = vpop.xlane.xlu1 %131 }
 0x234   :  { %193 = vlog2.f32 %v132_v20 }
 0x23a   :  { %v192_v21 = vpop.eup %191 }
 0x23b   :  { %v134_v22 = vmul.f32 0.6931472, %v192_v21 }
 0x23d   :  { %v137_v23 = vsub.f32 %v123_v12, %v134_v22 }
 0x23e   :  { %v194_v24 = vpop.eup %193 }
 0x23f   :  { %139 = vst [vmem:[#allocation7] sm:$0xff] %v137_v23  ;;  %v136_v25 = vmul.f32 0.6931472, %v194_v24 }
 0x241   :  { %v138_v26 = vsub.f32 %v124_v15, %v136_v25 }
 0x243   :  { %140 = vst [vmem:[#allocation7 + $0x8] sm:$0xff] %v138_v26 }
 0x244   :  { %250 = shalt.err (!%p247_p6)
}
 0x245   :  { %s251_s15 = scalar_lea.hbm %s338_s3, 256 }
 0x246   :  { %p252_p7 = scmp.ne.s32.totalorder %s338_s3, %s251_s15  ;;  %p255_p8 = scmp.lt.u32.totalorder %s251_s15, %s338_s3 }
 0x248   :  { %p257_p9 = pnand %p255_p8, %p252_p7 }
 0x24a   :  { %260 = shalt.err (!%p257_p9)
}
 0x24b   :  { %s274_s20 = smov 128   ;;  %s275_s21 = smov 8  }
 0x24c   :  { %152 = dma.vmem_to_hbm [thread:$0]  %s147_s2, 256, %s338_s3, [#allocation4], %s274_s20, %s274_s20, %s275_s21  }
 0x24d   :  { %265 = dma.done.wait [#allocation4], 256  }
 0x24e   :  { %266 = vsyncadd [#allocation4], 4294967040 }
 0x24f   :  { %156 = vsyncpa [#allocation3], 1 }
 0x250   :  { %157 = vsyncpa [#allocation6], 1 }
 0x251   :  { %158 = vsyncpa [#allocation4], 1 }

</bundles_post_ra>
